<compile_context>
chip_gen: v7x
topology: tpu7x:2x2x1
jax: 0.10.0
libtpu: 0.0.40
codegen_flags: <defaults>
</compile_context>

<pallas_src>
import functools

import jax
import jax.numpy as jnp
from jax import lax
from jax.experimental import pallas as pl
from jax.experimental.pallas import tpu as pltpu


def _round_up(x, m):
    return (x + m - 1) // m * m


def _adaptive_logsoftmax_kernel(x_ref, wf_ref, *rest, shortlist_size,
                                n_clusters, head_size, head_pad, hsz_pad,
                                cutoffs, h_dtype):
    """One grid step processes a (tm, D) tile of rows.

    rest = (w2_0, ..., w2_{n_clusters-1}, out_ref)
    """
    w2_refs = rest[:n_clusters]
    out_ref = rest[n_clusters]

    x = x_ref[...]                                            # (tm, D) bf16

    # ---- ONE fused MXU pass: [ head | w1_cluster_0 | ... | w1_cluster_k ] ----
    fused = jnp.dot(x, wf_ref[...],
                    preferred_element_type=jnp.float32)       # (tm, F) f32

    # ---- head log_softmax over the 128-padded head block (f32 math) ----
    head = fused[:, :head_pad]                                # lane-aligned slice
    col = lax.broadcasted_iota(jnp.int32, head.shape, 1)
    head = jnp.where(col < head_size, head, -1e30)            # mask pad columns
    m = jnp.max(head, axis=1, keepdims=True)
    lse = m + jnp.log(jnp.sum(jnp.exp(head - m), axis=1, keepdims=True))
    head_lp = head - lse                                      # (tm, head_pad)

    # Shortlist classes: direct column-slice store (no concat slab).
    out_ref[:, 0:shortlist_size] = head_lp[:, 0:shortlist_size].astype(out_ref.dtype)

    # ---- per-cluster second projection + log_softmax + cluster prior ----
    # TODO(synk): move this loop onto a second ('arbitrary') grid axis for
    #             very large vocabularies on v7x.
    for i in range(n_clusters):
        lo = head_pad + i * hsz_pad                           # 128-aligned offset
        h = fused[:, lo:lo + hsz_pad].astype(h_dtype)
        c = jnp.dot(h, w2_refs[i][...],
                    preferred_element_type=jnp.float32)       # (tm, osz_i)
        cm = jnp.max(c, axis=1, keepdims=True)
        clse = cm + jnp.log(jnp.sum(jnp.exp(c - cm), axis=1, keepdims=True))
        prior = head_lp[:, shortlist_size + i:shortlist_size + i + 1]
        seg = (c - clse) + prior
        out_ref[:, cutoffs[i]:cutoffs[i + 1]] = seg.astype(out_ref.dtype)


class AdaptiveLogSoftmaxPallas:
    """JAX/Pallas re-implementation of the PyTorch AdaptiveLogSoftmax module."""

    def __init__(self, in_features, n_classes, cutoffs, div_value=4.0,
                 head_bias=False, key=None, out_dtype=jnp.float32,
                 tail_h_dtype=jnp.bfloat16):
        cutoffs = list(cutoffs)
        if (cutoffs != sorted(cutoffs) or min(cutoffs) <= 0
                or max(cutoffs) > n_classes - 1
                or len(set(cutoffs)) != len(cutoffs)
                or any(int(c) != c for c in cutoffs)):
            raise ValueError("invalid cutoffs")
        if head_bias:
            # TODO(synk): head bias path not implemented (module default is False).
            raise NotImplementedError("head_bias=True not supported")

        self.in_features = in_features
        self.n_classes = n_classes
        self.cutoffs = [int(c) for c in cutoffs] + [n_classes]
        self.div_value = div_value
        self.shortlist_size = self.cutoffs[0]
        self.n_clusters = len(self.cutoffs) - 1
        self.head_size = self.shortlist_size + self.n_clusters
        self.hsz = int(in_features // (div_value ** 2))
        self.out_dtype = out_dtype
        # NOTE: the tail hidden activation is rounded to bf16 before the second
        # matmul (matches this module's own reference).  Set tail_h_dtype=f32
        # for closer agreement with a strict fp32 PyTorch module at large D/hsz.
        self.tail_h_dtype = tail_h_dtype

        # 128-aligned column layout of the fused first-stage weight:
        #   [ head (padded to head_pad) | w1_0 (padded to hsz_pad) | ... ]
        self.head_pad = _round_up(self.head_size, 128)
        self.hsz_pad = _round_up(max(self.hsz, 1), 128)
        self.fused_cols = self.head_pad + self.n_clusters * self.hsz_pad

        if key is None:
            key = jax.random.PRNGKey(0)
        k_head, k_tail = jax.random.split(key)

        # Deterministic synthetic parameters, stored transposed (in, out) and in
        # bfloat16 (2x MXU throughput, half the weight DMA bytes).
        head_w = 0.05 * jax.random.normal(
            k_head, (in_features, self.head_size), dtype=jnp.float32)
        blocks = [jnp.pad(head_w, ((0, 0), (0, self.head_pad - self.head_size)))]

        self.w2_list = []
        tks = jax.random.split(k_tail, self.n_clusters)
        for i in range(self.n_clusters):
            osz = self.cutoffs[i + 1] - self.cutoffs[i]
            k1, k2 = jax.random.split(tks[i])
            w1 = 0.05 * jax.random.normal(k1, (in_features, self.hsz), jnp.float32)
            w2 = 0.05 * jax.random.normal(k2, (self.hsz, osz), jnp.float32)
            blocks.append(jnp.pad(w1, ((0, 0), (0, self.hsz_pad - self.hsz))))
            self.w2_list.append(
                jnp.pad(w2, ((0, self.hsz_pad - self.hsz), (0, 0))).astype(jnp.bfloat16))
        self.w_fused = jnp.concatenate(blocks, axis=1).astype(jnp.bfloat16)

        # Chip detection (tiling heuristics only; safe fallback if it fails).
        try:
            kind = jax.devices()[0].device_kind.lower()
        except Exception:
            kind = ""
        self._is_v5e = ("v5" in kind) and (("lite" in kind) or ("5e" in kind))
        self._is_v7 = "v7" in kind

    # ---- tiling / VMEM budgeting ----
    def _vmem_capacity(self):
        try:
            cap = int(pltpu.get_tpu_info().vmem_capacity_bytes)
            if cap > 0:
                return cap
        except Exception:
            pass
        return (64 if self._is_v7 else 128) * 1024 * 1024

    def _pick_tile_and_vmem(self, N, weight_factor, out_buffers):
        cap = self._vmem_capacity()
        budget = int(cap * 0.75)

        D, C, F = self.in_features, self.n_classes, self.fused_cols
        w2_elems = sum(int(w.shape[0]) * int(w.shape[1]) for w in self.w2_list)
        w_bytes = weight_factor * 2 * (D * F + w2_elems)        # bf16 weights
        max_osz = max((int(w.shape[1]) for w in self.w2_list), default=0)
        out_row_bytes = C * jnp.dtype(self.out_dtype).itemsize

        def need(tm):
            x_tile = 2 * tm * D * 2                             # bf16, double buffered
            out_tile = out_buffers * tm * out_row_bytes
            temps = tm * (F + self.head_pad + C + max_osz) * 4  # f32 in-kernel slabs
            return w_bytes + x_tile + out_tile + temps

        # v5e: MXU rows saturate at 128 -> cap tm, spend VMEM on out buffering.
        candidates = (256, 128, 64, 32, 16) if self._is_v5e \
            else (512, 256, 128, 64, 32, 16)
        tm = 16
        for cand in candidates:
            if need(cand) <= budget:
                tm = cand
                break
        tm = max(16, min(tm, _round_up(N, 16)))
        # Prefer >= 2 row tiles so the 'parallel' axis can split across cores.
        if N >= 32:
            while tm >= 32 and (N + tm - 1) // tm < 2:
                tm //= 2
        return tm, budget

    # ---- Pallas hot path: all matmuls + log_softmax happen in the kernel ----
    def _run(self, xb, N, advanced_pipelining):
        D, C = self.in_features, self.n_classes
        out_buffers = 3 if (self._is_v5e and advanced_pipelining) else 2
        weight_factor = 1 if advanced_pipelining else 2
        tm, vmem_limit = self._pick_tile_and_vmem(N, weight_factor, out_buffers)
        grid = (N + tm - 1) // tm                               # no wrapper pad of x

        def wspec(shape):
            if advanced_pipelining:
                # Constant index_map -> single-buffer the resident weights.
                return pl.BlockSpec(shape, lambda i: (0, 0),
                                    pipeline_mode=pl.Buffered(1))
            return pl.BlockSpec(shape, lambda i: (0, 0))

        in_specs = [pl.BlockSpec((tm, D), lambda i: (i, 0)),    # x rows
                    wspec(self.w_fused.shape)]                  # fused head+W1
        in_specs += [wspec(w2.shape) for w2 in self.w2_list]    # per-cluster W2

        if advanced_pipelining and self._is_v5e:
            out_spec = pl.BlockSpec((tm, C), lambda i: (i, 0),
                                    pipeline_mode=pl.Buffered(3))
        else:
            out_spec = pl.BlockSpec((tm, C), lambda i: (i, 0))

        kernel = functools.partial(
            _adaptive_logsoftmax_kernel,
            shortlist_size=self.shortlist_size,
            n_clusters=self.n_clusters,
            head_size=self.head_size,
            head_pad=self.head_pad,
            hsz_pad=self.hsz_pad,
            cutoffs=tuple(self.cutoffs),
            h_dtype=self.tail_h_dtype,
        )

        tail_classes = C - self.shortlist_size
        out_itemsize = jnp.dtype(self.out_dtype).itemsize
        try:
            cost = pl.CostEstimate(
                flops=int(2 * N * (D * self.fused_cols
                                   + self.hsz_pad * tail_classes)),
                transcendentals=int(N * (self.head_pad + tail_classes
                                         + 2 * (1 + self.n_clusters))),
                bytes_accessed=int(N * D * 2
                                   + 2 * (D * self.fused_cols
                                          + self.hsz_pad * tail_classes)
                                   + N * C * out_itemsize))
        except Exception:
            cost = None

        return pl.pallas_call(
            kernel,
            out_shape=jax.ShapeDtypeStruct((N, C), self.out_dtype),
            grid_spec=pltpu.PrefetchScalarGridSpec(
                num_scalar_prefetch=0,
                grid=(grid,),
                in_specs=in_specs,
                out_specs=out_spec),
            compiler_params=pltpu.CompilerParams(
                dimension_semantics=("parallel",),
                vmem_limit_bytes=vmem_limit),
            cost_estimate=cost,
        )(xb, self.w_fused, *self.w2_list)

    def log_prob(self, x):
        N, D = x.shape
        assert D == self.in_features
        xb = x.astype(jnp.bfloat16)
        try:
            return self._run(xb, N, advanced_pipelining=True)
        except Exception:
            # pipeline_mode / Buffered not supported by this jax (or VMEM too
            # tight single-buffered): retry with plain double-buffered specs.
            return self._run(xb, N, advanced_pipelining=False)

    def __call__(self, x, dim=1):
        assert x.ndim == 3
        d1, d2, _ = x.shape
        ys = x.reshape(d1 * d2, -1)
        return self.log_prob(ys).reshape(d1, d2, -1)

    # ---- pure-JAX reference with the same precision policy (for checks) ----
    def _ref(self, x):
        d1, d2, _ = x.shape
        ys = x.reshape(d1 * d2, -1).astype(jnp.bfloat16)
        fused = jnp.dot(ys, self.w_fused, preferred_element_type=jnp.float32)
        head_lp = jax.nn.log_softmax(fused[:, :self.head_size], axis=1)
        outs = [head_lp[:, :self.shortlist_size]]
        for i, w2 in enumerate(self.w2_list):
            lo = self.head_pad + i * self.hsz_pad
            h = fused[:, lo:lo + self.hsz_pad].astype(self.tail_h_dtype)
            c = jnp.dot(h, w2, preferred_element_type=jnp.float32)
            c_lp = jax.nn.log_softmax(c, axis=1)
            c_lp = c_lp + head_lp[:, self.shortlist_size + i:
                                  self.shortlist_size + i + 1]
            outs.append(c_lp)
        out = jnp.concatenate(outs, axis=1).astype(self.out_dtype)
        return out.reshape(d1, d2, -1)


if __name__ == "__main__":
    d1, d2 = 2, 8                 # N = 16 rows
    in_features = 32
    n_classes = 24
    cutoffs = [8, 16]             # shortlist=8, clusters of sizes 8 and 8

    key = jax.random.PRNGKey(0)
    k_param, k_x = jax.random.split(key)

    model = AdaptiveLogSoftmaxPallas(in_features, n_classes, cutoffs, key=k_param)
    x = jax.random.normal(k_x, (d1, d2, in_features), dtype=jnp.float32)

    out = model(x)
    out = jax.block_until_ready(out)

    ref = model._ref(x)
    assert out.shape == (d1, d2, n_classes)
    assert bool(jnp.allclose(out, ref, atol=1e-3, rtol=1e-3)), "mismatch vs reference"
    print("KERNEL_OK")
</pallas_src>

<mosaic_0001>
module attributes {stable_mosaic.version = 11 : i64} {
  func.func @_adaptive_logsoftmax_kernel(%arg0: i32, %arg1: memref<16x32xbf16, #tpu.memory_space<vmem>>, %arg2: memref<32x384xbf16, #tpu.memory_space<vmem>>, %arg3: memref<128x8xbf16, #tpu.memory_space<vmem>>, %arg4: memref<128x8xbf16, #tpu.memory_space<vmem>>, %arg5: memref<16x24xf32, #tpu.memory_space<vmem>>) attributes {dimension_semantics = [#tpu.dimension_semantics<parallel>], iteration_bounds = array<i64: 1>, scalar_prefetch = 0 : i64, scratch_operands = 0 : i64, tpu.core_type = #tpu.core_type<tc>, window_params = [{transform_indices = @transform_0, window_bounds = array<i64: 16, 32>}, {pipeline_mode = #tpu.pipeline_mode<synchronous>, transform_indices = @transform_1, window_bounds = array<i64: 32, 384>}, {pipeline_mode = #tpu.pipeline_mode<synchronous>, transform_indices = @transform_2, window_bounds = array<i64: 128, 8>}, {pipeline_mode = #tpu.pipeline_mode<synchronous>, transform_indices = @transform_3, window_bounds = array<i64: 128, 8>}, {transform_indices = @transform_4, window_bounds = array<i64: 16, 24>}]} {
    %c0 = arith.constant 0 : index
    %c0_0 = arith.constant 0 : index
    %0 = vector.load %arg1[%c0, %c0_0] : memref<16x32xbf16, #tpu.memory_space<vmem>>, vector<16x32xbf16>
    %c0_1 = arith.constant 0 : index
    %c0_2 = arith.constant 0 : index
    %1 = vector.load %arg2[%c0_1, %c0_2] : memref<32x384xbf16, #tpu.memory_space<vmem>>, vector<32x384xbf16>
    %cst = arith.constant dense<0.000000e+00> : vector<16x384xf32>
    %2 = tpu.matmul %0, %1, %cst {dimension_numbers = #tpu.dot_dimension_numbers<[1], [0], [0], [1], [0, 0, 1, 1], [], []>} : vector<16x32xbf16>, vector<32x384xbf16>, vector<16x384xf32> -> vector<16x384xf32>
    %3 = vector.extract_strided_slice %2 {offsets = [0, 0], sizes = [16, 128], strides = [1, 1]} : vector<16x384xf32> to vector<16x128xf32>
    %4 = tpu.iota {dimensions = array<i32: 1>} : vector<16x128xi32>
    %c10_i32 = arith.constant 10 : i32
    %5 = vector.broadcast %c10_i32 : i32 to vector<16x128xi32>
    %6 = arith.cmpi slt, %4, %5 : vector<16x128xi32>
    %cst_3 = arith.constant -1.000000e+30 : f32
    %7 = vector.broadcast %cst_3 : f32 to vector<16x128xf32>
    %8 = arith.select %6, %3, %7 : vector<16x128xi1>, vector<16x128xf32>
    %cst_4 = arith.constant dense<0xFF800000> : vector<16xf32>
    %9 = vector.multi_reduction <maximumf>, %8, %cst_4 [1] : vector<16x128xf32> to vector<16xf32>
    %10 = vector.shape_cast %9 : vector<16xf32> to vector<16x1xf32>
    %11 = vector.broadcast %10 : vector<16x1xf32> to vector<16x128xf32>
    %12 = arith.subf %8, %11 : vector<16x128xf32>
    %13 = math.exp %12 : vector<16x128xf32>
    %cst_5 = arith.constant dense<0.000000e+00> : vector<16xf32>
    %14 = vector.multi_reduction <add>, %13, %cst_5 [1] : vector<16x128xf32> to vector<16xf32>
    %15 = vector.shape_cast %14 : vector<16xf32> to vector<16x1xf32>
    %16 = math.log %15 : vector<16x1xf32>
    %17 = arith.addf %10, %16 : vector<16x1xf32>
    %18 = vector.broadcast %17 : vector<16x1xf32> to vector<16x128xf32>
    %19 = arith.subf %8, %18 : vector<16x128xf32>
    %20 = vector.extract_strided_slice %19 {offsets = [0, 0], sizes = [16, 8], strides = [1, 1]} : vector<16x128xf32> to vector<16x8xf32>
    %c0_6 = arith.constant 0 : index
    %c0_7 = arith.constant 0 : index
    %21 = vector.load %arg5[%c0_6, %c0_7] : memref<16x24xf32, #tpu.memory_space<vmem>>, vector<16x8xf32>
    tpu.vector_store %arg5[%c0_6, %c0_7], %20 {strides = array<i32>} : memref<16x24xf32, #tpu.memory_space<vmem>>, vector<16x8xf32>,
    %22 = vector.extract_strided_slice %2 {offsets = [0, 128], sizes = [16, 128], strides = [1, 1]} : vector<16x384xf32> to vector<16x128xf32>
    %23 = arith.truncf %22 : vector<16x128xf32> to vector<16x128xbf16>
    %c0_8 = arith.constant 0 : index
    %c0_9 = arith.constant 0 : index
    %24 = vector.load %arg3[%c0_8, %c0_9] : memref<128x8xbf16, #tpu.memory_space<vmem>>, vector<128x8xbf16>
    %cst_10 = arith.constant dense<0.000000e+00> : vector<16x8xf32>
    %25 = tpu.matmul %23, %24, %cst_10 {dimension_numbers = #tpu.dot_dimension_numbers<[1], [0], [0], [1], [0, 0, 1, 1], [], []>} : vector<16x128xbf16>, vector<128x8xbf16>, vector<16x8xf32> -> vector<16x8xf32>
    %cst_11 = arith.constant dense<0xFF800000> : vector<16xf32>
    %26 = vector.multi_reduction <maximumf>, %25, %cst_11 [1] : vector<16x8xf32> to vector<16xf32>
    %27 = vector.shape_cast %26 : vector<16xf32> to vector<16x1xf32>
    %28 = vector.broadcast %27 : vector<16x1xf32> to vector<16x8xf32>
    %29 = arith.subf %25, %28 : vector<16x8xf32>
    %30 = math.exp %29 : vector<16x8xf32>
    %cst_12 = arith.constant dense<0.000000e+00> : vector<16xf32>
    %31 = vector.multi_reduction <add>, %30, %cst_12 [1] : vector<16x8xf32> to vector<16xf32>
    %32 = vector.shape_cast %31 : vector<16xf32> to vector<16x1xf32>
    %33 = math.log %32 : vector<16x1xf32>
    %34 = arith.addf %27, %33 : vector<16x1xf32>
    %35 = vector.extract_strided_slice %19 {offsets = [0, 8], sizes = [16, 1], strides = [1, 1]} : vector<16x128xf32> to vector<16x1xf32>
    %36 = vector.broadcast %34 : vector<16x1xf32> to vector<16x8xf32>
    %37 = arith.subf %25, %36 : vector<16x8xf32>
    %38 = vector.broadcast %35 : vector<16x1xf32> to vector<16x8xf32>
    %39 = arith.addf %37, %38 : vector<16x8xf32>
    %c0_13 = arith.constant 0 : index
    %c8 = arith.constant 8 : index
    %40 = vector.load %arg5[%c0_13, %c8] : memref<16x24xf32, #tpu.memory_space<vmem>>, vector<16x8xf32>
    tpu.vector_store %arg5[%c0_13, %c8], %39 {strides = array<i32>} : memref<16x24xf32, #tpu.memory_space<vmem>>, vector<16x8xf32>,
    %41 = vector.extract_strided_slice %2 {offsets = [0, 256], sizes = [16, 128], strides = [1, 1]} : vector<16x384xf32> to vector<16x128xf32>
    %42 = arith.truncf %41 : vector<16x128xf32> to vector<16x128xbf16>
    %c0_14 = arith.constant 0 : index
    %c0_15 = arith.constant 0 : index
    %43 = vector.load %arg4[%c0_14, %c0_15] : memref<128x8xbf16, #tpu.memory_space<vmem>>, vector<128x8xbf16>
    %cst_16 = arith.constant dense<0.000000e+00> : vector<16x8xf32>
    %44 = tpu.matmul %42, %43, %cst_16 {dimension_numbers = #tpu.dot_dimension_numbers<[1], [0], [0], [1], [0, 0, 1, 1], [], []>} : vector<16x128xbf16>, vector<128x8xbf16>, vector<16x8xf32> -> vector<16x8xf32>
    %cst_17 = arith.constant dense<0xFF800000> : vector<16xf32>
    %45 = vector.multi_reduction <maximumf>, %44, %cst_17 [1] : vector<16x8xf32> to vector<16xf32>
    %46 = vector.shape_cast %45 : vector<16xf32> to vector<16x1xf32>
    %47 = vector.broadcast %46 : vector<16x1xf32> to vector<16x8xf32>
    %48 = arith.subf %44, %47 : vector<16x8xf32>
    %49 = math.exp %48 : vector<16x8xf32>
    %cst_18 = arith.constant dense<0.000000e+00> : vector<16xf32>
    %50 = vector.multi_reduction <add>, %49, %cst_18 [1] : vector<16x8xf32> to vector<16xf32>
    %51 = vector.shape_cast %50 : vector<16xf32> to vector<16x1xf32>
    %52 = math.log %51 : vector<16x1xf32>
    %53 = arith.addf %46, %52 : vector<16x1xf32>
    %54 = vector.extract_strided_slice %19 {offsets = [0, 9], sizes = [16, 1], strides = [1, 1]} : vector<16x128xf32> to vector<16x1xf32>
    %55 = vector.broadcast %53 : vector<16x1xf32> to vector<16x8xf32>
    %56 = arith.subf %44, %55 : vector<16x8xf32>
    %57 = vector.broadcast %54 : vector<16x1xf32> to vector<16x8xf32>
    %58 = arith.addf %56, %57 : vector<16x8xf32>
    %c0_19 = arith.constant 0 : index
    %c16 = arith.constant 16 : index
    %59 = vector.load %arg5[%c0_19, %c16] : memref<16x24xf32, #tpu.memory_space<vmem>>, vector<16x8xf32>
    tpu.vector_store %arg5[%c0_19, %c16], %58 {strides = array<i32>} : memref<16x24xf32, #tpu.memory_space<vmem>>, vector<16x8xf32>,
    return
  }
  func.func @transform_0(%arg0: i32) -> (i32, i32) {
    %c0_i32 = arith.constant 0 : i32
    %c0_i32_0 = arith.constant 0 : i32
    return %arg0, %c0_i32 : i32, i32
  }
  func.func @transform_1(%arg0: i32) -> (i32, i32) {
    %c0_i32 = arith.constant 0 : i32
    %c0_i32_0 = arith.constant 0 : i32
    %c0_i32_1 = arith.constant 0 : i32
    return %c0_i32, %c0_i32_0 : i32, i32
  }
  func.func @transform_2(%arg0: i32) -> (i32, i32) {
    %c0_i32 = arith.constant 0 : i32
    %c0_i32_0 = arith.constant 0 : i32
    %c0_i32_1 = arith.constant 0 : i32
    return %c0_i32, %c0_i32_0 : i32, i32
  }
  func.func @transform_3(%arg0: i32) -> (i32, i32) {
    %c0_i32 = arith.constant 0 : i32
    %c0_i32_0 = arith.constant 0 : i32
    %c0_i32_1 = arith.constant 0 : i32
    return %c0_i32, %c0_i32_0 : i32, i32
  }
  func.func @transform_4(%arg0: i32) -> (i32, i32) {
    %c0_i32 = arith.constant 0 : i32
    %c0_i32_0 = arith.constant 0 : i32
    return %arg0, %c0_i32 : i32, i32
  }
}

module attributes {stable_mosaic.version = 11 : i64} {
  func.func @_adaptive_logsoftmax_kernel(%arg0: i32, %arg1: memref<16x32xbf16, #tpu.memory_space<vmem>>, %arg2: memref<32x384xbf16, #tpu.memory_space<vmem>>, %arg3: memref<128x8xbf16, #tpu.memory_space<vmem>>, %arg4: memref<128x8xbf16, #tpu.memory_space<vmem>>, %arg5: memref<16x24xf32, #tpu.memory_space<vmem>>) attributes {dimension_semantics = [#tpu.dimension_semantics<parallel>], iteration_bounds = array<i64: 1>, scalar_prefetch = 0 : i64, scratch_operands = 0 : i64, tpu.core_type = #tpu.core_type<tc>, window_params = [{transform_indices = @transform_0, window_bounds = array<i64: 16, 32>}, {pipeline_mode = #tpu.pipeline_mode<synchronous>, transform_indices = @transform_1, window_bounds = array<i64: 32, 384>}, {pipeline_mode = #tpu.pipeline_mode<synchronous>, transform_indices = @transform_2, window_bounds = array<i64: 128, 8>}, {pipeline_mode = #tpu.pipeline_mode<synchronous>, transform_indices = @transform_3, window_bounds = array<i64: 128, 8>}, {transform_indices = @transform_4, window_bounds = array<i64: 16, 24>}]} {
    %c0 = arith.constant 0 : index
    %c0_0 = arith.constant 0 : index
    %0 = vector.load %arg1[%c0, %c0_0] : memref<16x32xbf16, #tpu.memory_space<vmem>>, vector<16x32xbf16>
    %c0_1 = arith.constant 0 : index
    %c0_2 = arith.constant 0 : index
    %1 = vector.load %arg2[%c0_1, %c0_2] : memref<32x384xbf16, #tpu.memory_space<vmem>>, vector<32x384xbf16>
    %cst = arith.constant dense<0.000000e+00> : vector<16x384xf32>
    %2 = tpu.matmul %0, %1, %cst {dimension_numbers = #tpu.dot_dimension_numbers<[1], [0], [0], [1], [0, 0, 1, 1], [], []>} : vector<16x32xbf16>, vector<32x384xbf16>, vector<16x384xf32> -> vector<16x384xf32>
    %3 = vector.extract_strided_slice %2 {offsets = [0, 0], sizes = [16, 128], strides = [1, 1]} : vector<16x384xf32> to vector<16x128xf32>
    %4 = tpu.iota {dimensions = array<i32: 1>} : vector<16x128xi32>
    %c10_i32 = arith.constant 10 : i32
    %5 = vector.broadcast %c10_i32 : i32 to vector<16x128xi32>
    %6 = arith.cmpi slt, %4, %5 : vector<16x128xi32>
    %cst_3 = arith.constant -1.000000e+30 : f32
    %7 = vector.broadcast %cst_3 : f32 to vector<16x128xf32>
    %8 = arith.select %6, %3, %7 : vector<16x128xi1>, vector<16x128xf32>
    %cst_4 = arith.constant dense<0xFF800000> : vector<16xf32>
    %9 = vector.multi_reduction <maximumf>, %8, %cst_4 [1] : vector<16x128xf32> to vector<16xf32>
    %10 = vector.shape_cast %9 : vector<16xf32> to vector<16x1xf32>
    %11 = vector.broadcast %10 : vector<16x1xf32> to vector<16x128xf32>
    %12 = arith.subf %8, %11 : vector<16x128xf32>
    %13 = math.exp %12 : vector<16x128xf32>
    %cst_5 = arith.constant dense<0.000000e+00> : vector<16xf32>
    %14 = vector.multi_reduction <add>, %13, %cst_5 [1] : vector<16x128xf32> to vector<16xf32>
    %15 = vector.shape_cast %14 : vector<16xf32> to vector<16x1xf32>
    %16 = math.log %15 : vector<16x1xf32>
    %17 = arith.addf %10, %16 : vector<16x1xf32>
    %18 = vector.broadcast %17 : vector<16x1xf32> to vector<16x128xf32>
    %19 = arith.subf %8, %18 : vector<16x128xf32>
    %20 = vector.extract_strided_slice %19 {offsets = [0, 0], sizes = [16, 8], strides = [1, 1]} : vector<16x128xf32> to vector<16x8xf32>
    %c0_6 = arith.constant 0 : index
    %c0_7 = arith.constant 0 : index
    %21 = vector.load %arg5[%c0_6, %c0_7] : memref<16x24xf32, #tpu.memory_space<vmem>>, vector<16x8xf32>
    tpu.vector_store %arg5[%c0_6, %c0_7], %20 {strides = array<i32>} : memref<16x24xf32, #tpu.memory_space<vmem>>, vector<16x8xf32>,
    %22 = vector.extract_strided_slice %2 {offsets = [0, 128], sizes = [16, 128], strides = [1, 1]} : vector<16x384xf32> to vector<16x128xf32>
    %23 = arith.truncf %22 : vector<16x128xf32> to vector<16x128xbf16>
    %c0_8 = arith.constant 0 : index
    %c0_9 = arith.constant 0 : index
    %24 = vector.load %arg3[%c0_8, %c0_9] : memref<128x8xbf16, #tpu.memory_space<vmem>>, vector<128x8xbf16>
    %cst_10 = arith.constant dense<0.000000e+00> : vector<16x8xf32>
    %25 = tpu.matmul %23, %24, %cst_10 {dimension_numbers = #tpu.dot_dimension_numbers<[1], [0], [0], [1], [0, 0, 1, 1], [], []>} : vector<16x128xbf16>, vector<128x8xbf16>, vector<16x8xf32> -> vector<16x8xf32>
    %cst_11 = arith.constant dense<0xFF800000> : vector<16xf32>
    %26 = vector.multi_reduction <maximumf>, %25, %cst_11 [1] : vector<16x8xf32> to vector<16xf32>
    %27 = vector.shape_cast %26 : vector<16xf32> to vector<16x1xf32>
    %28 = vector.broadcast %27 : vector<16x1xf32> to vector<16x8xf32>
    %29 = arith.subf %25, %28 : vector<16x8xf32>
    %30 = math.exp %29 : vector<16x8xf32>
    %cst_12 = arith.constant dense<0.000000e+00> : vector<16xf32>
    %31 = vector.multi_reduction <add>, %30, %cst_12 [1] : vector<16x8xf32> to vector<16xf32>
    %32 = vector.shape_cast %31 : vector<16xf32> to vector<16x1xf32>
    %33 = math.log %32 : vector<16x1xf32>
    %34 = arith.addf %27, %33 : vector<16x1xf32>
    %35 = vector.extract_strided_slice %19 {offsets = [0, 8], sizes = [16, 1], strides = [1, 1]} : vector<16x128xf32> to vector<16x1xf32>
    %36 = vector.broadcast %34 : vector<16x1xf32> to vector<16x8xf32>
    %37 = arith.subf %25, %36 : vector<16x8xf32>
    %38 = vector.broadcast %35 : vector<16x1xf32> to vector<16x8xf32>
    %39 = arith.addf %37, %38 : vector<16x8xf32>
    %c0_13 = arith.constant 0 : index
    %c8 = arith.constant 8 : index
    %40 = vector.load %arg5[%c0_13, %c8] : memref<16x24xf32, #tpu.memory_space<vmem>>, vector<16x8xf32>
    tpu.vector_store %arg5[%c0_13, %c8], %39 {strides = array<i32>} : memref<16x24xf32, #tpu.memory_space<vmem>>, vector<16x8xf32>,
    %41 = vector.extract_strided_slice %2 {offsets = [0, 256], sizes = [16, 128], strides = [1, 1]} : vector<16x384xf32> to vector<16x128xf32>
    %42 = arith.truncf %41 : vector<16x128xf32> to vector<16x128xbf16>
    %c0_14 = arith.constant 0 : index
    %c0_15 = arith.constant 0 : index
    %43 = vector.load %arg4[%c0_14, %c0_15] : memref<128x8xbf16, #tpu.memory_space<vmem>>, vector<128x8xbf16>
    %cst_16 = arith.constant dense<0.000000e+00> : vector<16x8xf32>
    %44 = tpu.matmul %42, %43, %cst_16 {dimension_numbers = #tpu.dot_dimension_numbers<[1], [0], [0], [1], [0, 0, 1, 1], [], []>} : vector<16x128xbf16>, vector<128x8xbf16>, vector<16x8xf32> -> vector<16x8xf32>
    %cst_17 = arith.constant dense<0xFF800000> : vector<16xf32>
    %45 = vector.multi_reduction <maximumf>, %44, %cst_17 [1] : vector<16x8xf32> to vector<16xf32>
    %46 = vector.shape_cast %45 : vector<16xf32> to vector<16x1xf32>
    %47 = vector.broadcast %46 : vector<16x1xf32> to vector<16x8xf32>
    %48 = arith.subf %44, %47 : vector<16x8xf32>
    %49 = math.exp %48 : vector<16x8xf32>
    %cst_18 = arith.constant dense<0.000000e+00> : vector<16xf32>
    %50 = vector.multi_reduction <add>, %49, %cst_18 [1] : vector<16x8xf32> to vector<16xf32>
    %51 = vector.shape_cast %50 : vector<16xf32> to vector<16x1xf32>
    %52 = math.log %51 : vector<16x1xf32>
    %53 = arith.addf %46, %52 : vector<16x1xf32>
    %54 = vector.extract_strided_slice %19 {offsets = [0, 9], sizes = [16, 1], strides = [1, 1]} : vector<16x128xf32> to vector<16x1xf32>
    %55 = vector.broadcast %53 : vector<16x1xf32> to vector<16x8xf32>
    %56 = arith.subf %44, %55 : vector<16x8xf32>
    %57 = vector.broadcast %54 : vector<16x1xf32> to vector<16x8xf32>
    %58 = arith.addf %56, %57 : vector<16x8xf32>
    %c0_19 = arith.constant 0 : index
    %c16 = arith.constant 16 : index
    %59 = vector.load %arg5[%c0_19, %c16] : memref<16x24xf32, #tpu.memory_space<vmem>>, vector<16x8xf32>
    tpu.vector_store %arg5[%c0_19, %c16], %58 {strides = array<i32>} : memref<16x24xf32, #tpu.memory_space<vmem>>, vector<16x8xf32>,
    return
  }
  func.func @transform_0(%arg0: i32) -> (i32, i32) {
    %c0_i32 = arith.constant 0 : i32
    %c0_i32_0 = arith.constant 0 : i32
    return %arg0, %c0_i32 : i32, i32
  }
  func.func @transform_1(%arg0: i32) -> (i32, i32) {
    %c0_i32 = arith.constant 0 : i32
    %c0_i32_0 = arith.constant 0 : i32
    %c0_i32_1 = arith.constant 0 : i32
    return %c0_i32, %c0_i32_0 : i32, i32
  }
  func.func @transform_2(%arg0: i32) -> (i32, i32) {
    %c0_i32 = arith.constant 0 : i32
    %c0_i32_0 = arith.constant 0 : i32
    %c0_i32_1 = arith.constant 0 : i32
    return %c0_i32, %c0_i32_0 : i32, i32
  }
  func.func @transform_3(%arg0: i32) -> (i32, i32) {
    %c0_i32 = arith.constant 0 : i32
    %c0_i32_0 = arith.constant 0 : i32
    %c0_i32_1 = arith.constant 0 : i32
    return %c0_i32, %c0_i32_0 : i32, i32
  }
  func.func @transform_4(%arg0: i32) -> (i32, i32) {
    %c0_i32 = arith.constant 0 : i32
    %c0_i32_0 = arith.constant 0 : i32
    return %arg0, %c0_i32 : i32, i32
  }
}

</mosaic_0001>

<bundles_post_ra>
// kernel: tpu_custom_call.1
= control target key start
LH: loop header
LB: loop body
LE: loop exit
PB: predicated region body
PF: predicated region fallthrough
CT: control target
= control target key end

     0   :  { %9 = vsyncpa [#allocation3], 0  ;;  %s1041_s0 = inlined_call_operand.hbm [shape: bf16[16,32], index: 0, kind: input, shape index: {}]   ;;  %s1042_s1 = inlined_call_operand.hbm [shape: bf16[32,384], index: 1, kind: input, shape index: {}]   ;;  %s1043_s2 = inlined_call_operand.hbm [shape: bf16[128,8], index: 2, kind: input, shape index: {}]   ;;  %s1044_s3 = inlined_call_operand.hbm [shape: bf16[128,8], index: 3, kind: input, shape index: {}]   ;;  %s1045_s4 = inlined_call_operand.hbm [shape: f32[16,24], index: 4, kind: output, shape index: {}]  }
   0x1   :  { %10 = vsyncpa [#allocation6], 0 }
   0x2   :  { %11 = vsyncpa [#allocation9], 0 }
   0x3   :  { %12 = vsyncpa [#allocation4], 0  ;;  %s848_s15 = smov [#allocation5]   ;;  %s730_s19 = scalar_lea.hbm %s1042_s1, 768 }
   0x4   :  { %s30_s16 = sshll.u32 %s848_s15, 4  ;;  %p731_p0 = scmp.ne.s32.totalorder %s1042_s1, %s730_s19  ;;  %s31_s16 = int_to_ptr.vmem [resolvable:$true] %s30_s16 }
   0x5   :  { %p734_p1 = scmp.lt.u32.totalorder %s730_s19, %s1042_s1 }
   0x7   :  { %p736_p2 = pnand %p734_p1, %p731_p0 }
   0x9   :  { %739 = shalt.err (!%p736_p2)
}
   0xa   :  { %s740_s24 = scalar_lea.vmem %s31_s16, 768  ;;  %p745_p4 = scmp.lt.s32.totalorder %s31_s16, %s31_s16 }
   0xb   :  { %p741_p3 = scmp.ne.s32.totalorder %s31_s16, %s740_s24  ;;  %p746_p5 = scmp.lt.s32.totalorder %s740_s24, %s740_s24 }
   0xd   :  { %p747_p6 = por %p746_p5, %p745_p4 }
   0xf   :  { %p748_p7 = pnand %p747_p6, %p741_p3 }
  0x11   :  { %751 = shalt.err (!%p748_p7)
}
  0x12   :  { %s849_s25 = smov 192   ;;  %s850_s26 = smov 12  }
  0x13   :  { %36 = dma.hbm_to_vmem [thread:$0]  %s1042_s1, 768, %s31_s16, [#allocation6], %s849_s25, %s849_s25, %s850_s26  }
  0x14   :  { %s851_s29 = smov [#allocation2]   ;;  %s752_s7 = scalar_lea.hbm %s1041_s0, 128 }
  0x15   :  { %s18_s30 = sshll.u32 %s851_s29, 4  ;;  %p753_p8 = scmp.ne.s32.totalorder %s1041_s0, %s752_s7  ;;  %s19_s30 = int_to_ptr.vmem [resolvable:$true] %s18_s30 }
  0x16   :  { %p756_p9 = scmp.lt.u32.totalorder %s752_s7, %s1041_s0 }
  0x18   :  { %p758_p10 = pnand %p756_p9, %p753_p8 }
  0x1a   :  { %761 = shalt.err (!%p758_p10)
}
  0x1b   :  { %s762_s12 = scalar_lea.vmem %s19_s30, 128  ;;  %p767_p12 = scmp.lt.s32.totalorder %s19_s30, %s19_s30 }
  0x1c   :  { %p763_p11 = scmp.ne.s32.totalorder %s19_s30, %s762_s12  ;;  %p768_p13 = scmp.lt.s32.totalorder %s762_s12, %s762_s12 }
  0x1e   :  { %p769_p0 = por %p768_p13, %p767_p12 }
  0x20   :  { %p770_p1 = pnand %p769_p0, %p763_p11 }
  0x22   :  { %773 = shalt.err (!%p770_p1)
}
  0x23   :  { %s852_s1 = smov 64   ;;  %s853_s13 = smov 4  }
  0x24   :  { %24 = dma.hbm_to_vmem [thread:$0]  %s1041_s0, 128, %s19_s30, [#allocation3], %s852_s1, %s852_s1, %s853_s13  }
  0x25   :  { %s854_s16 = smov [#allocation7]   ;;  %s855_s18 = smov [#allocation8]  }
  0x26   :  { %s42_s17 = sshll.u32 %s854_s16, 4  ;;  %s54_s19 = sshll.u32 %s855_s18, 4  ;;  %s43_s17 = int_to_ptr.vmem [resolvable:$true] %s42_s17  ;;  %s917_s19 = int_to_ptr.vmem [resolvable:$true] %s54_s19 }
  0x27   :  { %s774_s22 = scalar_lea.hbm %s1043_s2, 1024 }
  0x28   :  { %p775_p2 = scmp.ne.s32.totalorder %s1043_s2, %s774_s22  ;;  %p778_p3 = scmp.lt.u32.totalorder %s774_s22, %s1043_s2 }
  0x2a   :  { %p780_p4 = pnand %p778_p3, %p775_p2 }
  0x2c   :  { %783 = shalt.err (!%p780_p4)
}
  0x2d   :  { %s784_s0 = scalar_lea.vmem %s43_s17, 1024  ;;  %p789_p6 = scmp.lt.s32.totalorder %s43_s17, %s43_s17 }
  0x2e   :  { %p785_p5 = scmp.ne.s32.totalorder %s43_s17, %s784_s0  ;;  %p790_p7 = scmp.lt.s32.totalorder %s784_s0, %s784_s0 }
  0x30   :  { %p791_p8 = por %p790_p7, %p789_p6 }
  0x32   :  { %p792_p9 = pnand %p791_p8, %p785_p5 }
  0x34   :  { %795 = shalt.err (!%p792_p9)
}
  0x35   :  { %48 = dma.hbm_to_vmem [thread:$0]  %s1043_s2, 1024, %s43_s17, [#allocation6], %s852_s1, %s852_s1, %s853_s13  }
  0x36   :  { %s796_s5 = scalar_lea.hbm %s1044_s3, 1024 }
  0x37   :  { %p797_p10 = scmp.ne.s32.totalorder %s1044_s3, %s796_s5  ;;  %p800_p11 = scmp.lt.u32.totalorder %s796_s5, %s1044_s3 }
  0x39   :  { %p802_p12 = pnand %p800_p11, %p797_p10 }
  0x3b   :  { %805 = shalt.err (!%p802_p12)
}
  0x3c   :  { %s806_s10 = scalar_lea.vmem %s917_s19, 1024  ;;  %p811_p0 = scmp.lt.s32.totalorder %s917_s19, %s917_s19 }
  0x3d   :  { %p807_p13 = scmp.ne.s32.totalorder %s917_s19, %s806_s10  ;;  %p812_p1 = scmp.lt.s32.totalorder %s806_s10, %s806_s10 }
  0x3f   :  { %p813_p2 = por %p812_p1, %p811_p0 }
  0x41   :  { %p814_p3 = pnand %p813_p2, %p807_p13 }
  0x43   :  { %817 = shalt.err (!%p814_p3)
}
  0x44   :  { %60 = dma.hbm_to_vmem [thread:$0]  %s1044_s3, 1024, %s917_s19, [#allocation9], %s852_s1, %s852_s1, %s853_s13  }
  0x45   :  { %840 = dma.done.wait [#allocation3], 128  }
  0x46   :  { %841 = vsyncadd [#allocation3], 4294967168 }
  0x47   :  { %842 = dma.done.wait [#allocation6], 1792  }
  0x48   :  { %843 = vsyncadd [#allocation6], 4294965504 }
  0x49   :  { %844 = dma.done.wait [#allocation9], 1024  }
  0x4a   :  { %845 = vsyncadd [#allocation9], 4294966272  ;;  %v856_v0 = vmov 0.0   ;;  %vm857_vm0 = vmmov 0   ;;  %v858_v1 = vmov 0   ;;  %v689_v8 = vld [vmem:[#allocation2] sm:$0xff]   ;;  %v209_v25 = vlaneseq }
  0x4b   :  { %612 = vmatprep.subr.bf16.mxu1 %v856_v0  ;;  %616 = vmatprep.mubr.msk.bf16.mxu1 %vm857_vm0, %v856_v0  ;;  %v681_v2 = vld [vmem:[#allocation5 + $0x4] ss:$12 sps:$4 sm:$0xff]   ;;  %v683_v3 = vld [vmem:[#allocation5 + $0x8] ss:$12 sps:$4 sm:$0xff]   ;;  %v684_v4 = vld [vmem:[#allocation5] ss:$12 sps:$4 sm:$0xff]  }
  0x4c   :  { %157 = vmatprep.mubr.bf16.mxu0 %v858_v1  ;;  %125 = vmatprep.subr.bf16.mxu0 %v681_v2  ;;  %v685_v5 = vld [vmem:[#allocation5 + $0x1c] ss:$12 sps:$4 sm:$0xff]   ;;  %v687_v6 = vld [vmem:[#allocation5 + $0x20] ss:$12 sps:$4 sm:$0xff]   ;;  %v688_v7 = vld [vmem:[#allocation5 + $0x18] ss:$12 sps:$4 sm:$0xff]  }
  0x4d   :  { %613 = vmatpush3.bf16.msra.mxu1 %v683_v3  ;;  %126 = vmatpush1.bf16.msra.mxu0 %v684_v4  ;;  %vm121_vm1 = vcmask 261120   ;;  %v690_v9 = vld [vmem:[#allocation8] sm:$0xff]   ;;  %v692_v11 = vld [vmem:[#allocation8 + $0x8] sm:$0xff]   ;;  %v694_v13 = vld [vmem:[#allocation8 + $0x10] sm:$0xff]   ;;  %v210_v26 = vand.u32 127, %v209_v25  ;;  %vm236_vm3 = vcmask 64512  }
  0x4e   :  { %614 = vmatprep.subr.bf16.mxu1 %v856_v0  ;;  %127 = vmatprep.subr.bf16.mxu0 %v685_v5  ;;  %v691_v10 = vld [vmem:[#allocation7] sm:$0xff]   ;;  %v693_v12 = vld [vmem:[#allocation7 + $0x8] sm:$0xff]   ;;  %v695_v14 = vld [vmem:[#allocation7 + $0x10] sm:$0xff]   ;;  %v859_v59 = vmov 8   ;;  %s861_s3 = smov 16   ;;  %s862_s12 = smov 8  }
  0x4f   :  { %v696_v15 = vld [vmem:[#allocation8 + $0x18] sm:$0xff]   ;;  %v698_v17 = vld [vmem:[#allocation8 + $0x20] sm:$0xff]   ;;  %v700_v19 = vld [vmem:[#allocation8 + $0x28] sm:$0xff]   ;;  %vm211_vm2 = vcmp.lt.s32.totalorder %v210_v26, 10  ;;  %678 = vset.pattern.permute.xlu1 %v859_v59  ;;  %677 = vset.pattern.permute.xlu0 %v859_v59  ;;  %vm391_vm4 = vcmask 130112   ;;  %vm544_vm5 = vcmask 195712  }
  0x50   :  { %v697_v16 = vld [vmem:[#allocation7 + $0x18] sm:$0xff]   ;;  %v699_v18 = vld [vmem:[#allocation7 + $0x20] sm:$0xff]   ;;  %v701_v20 = vld [vmem:[#allocation7 + $0x28] sm:$0xff]   ;;  %s863_s1 = smov [#allocation10]  }
  0x51   :  { %615 = vmatpush3.bf16.msra.mxu1 %v687_v6  ;;  %128 = vmatpush1.bf16.msra.mxu0 %v688_v7  ;;  %v702_v21 = vld [vmem:[#allocation8 + $0x30] sm:$0xff]   ;;  %v704_v23 = vld [vmem:[#allocation8 + $0x38] sm:$0xff]   ;;  %s552_s13 = sshll.u32 %s863_s1, 4  ;;  %s553_s13 = int_to_ptr.vmem [resolvable:$true] %s552_s13 }
  0x52   :  { %640 = vmatprep.subr.bf16.mxu1 %v856_v0  ;;  %620 = vmatprep.subr.bf16.mxu0 %v856_v0  ;;  %v703_v22 = vld [vmem:[#allocation7 + $0x30] sm:$0xff]   ;;  %v705_v24 = vld [vmem:[#allocation7 + $0x38] sm:$0xff]   ;;  %s818_s14 = scalar_lea.vmem %s553_s13, 256  ;;  %p823_p5 = scmp.lt.s32.totalorder %s553_s13, %s553_s13 }
  0x53   :  { %p819_p4 = scmp.ne.s32.totalorder %s553_s13, %s818_s14  ;;  %p824_p6 = scmp.lt.s32.totalorder %s818_s14, %s818_s14 }
  0x54   :  { %617 = vmatmul.mubr.msk.bf16.vlgmr.msra.gmra.mrb[0].mxu1 %vm121_vm1, %v689_v8  ;;  %573 = vmatmul.mubr.msk.bf16.vlgmr.msra.gmra.mrb[0].mxu0 %vm121_vm1, %v689_v8 }
  0x55   :  { %641 = vmatpush3.bf16.msra.mxu1 %v690_v9  ;;  %621 = vmatpush3.bf16.msra.mxu0 %v691_v10  ;;  %p825_p7 = por %p824_p6, %p823_p5 }
  0x56   :  { %642 = vmatprep.subr.bf16.mxu1 %v856_v0  ;;  %622 = vmatprep.subr.bf16.mxu0 %v856_v0 }
  0x57   :  { %656 = vmatprep.mubr.msk.bf16.mxu1 %vm857_vm0, %v856_v0  ;;  %636 = vmatprep.mubr.msk.bf16.mxu0 %vm857_vm0, %v856_v0  ;;  %p826_p8 = pnand %p825_p7, %p819_p4 }
  0x59   :  { %643 = vmatpush3.bf16.msra.mxu1 %v692_v11  ;;  %623 = vmatpush3.bf16.msra.mxu0 %v693_v12 }
  0x5a   :  { %644 = vmatprep.subr.bf16.mxu1 %v856_v0  ;;  %624 = vmatprep.subr.bf16.mxu0 %v856_v0 }
  0x5d   :  { %645 = vmatpush3.bf16.msra.mxu1 %v694_v13  ;;  %625 = vmatpush3.bf16.msra.mxu0 %v695_v14 }
  0x5e   :  { %646 = vmatprep.subr.bf16.mxu1 %v856_v0  ;;  %626 = vmatprep.subr.bf16.mxu0 %v856_v0 }
  0x61   :  { %647 = vmatpush3.bf16.msra.mxu1 %v696_v15  ;;  %627 = vmatpush3.bf16.msra.mxu0 %v697_v16 }
  0x62   :  { %648 = vmatprep.subr.bf16.mxu1 %v856_v0  ;;  %628 = vmatprep.subr.bf16.mxu0 %v856_v0 }
  0x65   :  { %649 = vmatpush3.bf16.msra.mxu1 %v698_v17  ;;  %629 = vmatpush3.bf16.msra.mxu0 %v699_v18  ;;  %v860_v18 = vmov 9  }
  0x66   :  { %650 = vmatprep.subr.bf16.mxu1 %v856_v0  ;;  %630 = vmatprep.subr.bf16.mxu0 %v856_v0 }
  0x69   :  { %651 = vmatpush3.bf16.msra.mxu1 %v700_v19  ;;  %631 = vmatpush3.bf16.msra.mxu0 %v701_v20 }
  0x6a   :  { %652 = vmatprep.subr.bf16.mxu1 %v856_v0  ;;  %632 = vmatprep.subr.bf16.mxu0 %v856_v0 }
  0x6d   :  { %653 = vmatpush3.bf16.msra.mxu1 %v702_v21  ;;  %633 = vmatpush3.bf16.msra.mxu0 %v703_v22 }
  0x6e   :  { %654 = vmatprep.subr.bf16.mxu1 %v856_v0  ;;  %634 = vmatprep.subr.bf16.mxu0 %v856_v0 }
  0x71   :  { %655 = vmatpush3.bf16.msra.mxu1 %v704_v23  ;;  %635 = vmatpush3.bf16.msra.mxu0 %v705_v24 }
 0x127   :  { %v202_v27 = vpop.f32.mrb[0].mxu1  ;;  %v159_v28 = vpop.f32.mrb[0].mxu0 }
 0x128   :  { %v618_v29 = vpop.f32.mrb[1].mxu1  ;;  %v978_v30 = vsel %vm211_vm2, %v159_v28, -1e+30  ;;  %v161_v31 = vpop.f32.mrb[1].mxu0 }
 0x129   :  { %v205_v32 = vpop.f32.mrb[2].mxu1  ;;  %214 = vmax.xlane.f32.xlu0 %v978_v30  ;;  %v163_v34 = vpop.f32.mrb[2].mxu0 }
 0x12a   :  { %v394_v33 = vpack.c.bf16 %v205_v32, %v202_v27  ;;  %v619_v35 = vpop.f32.mrb[3].mxu1  ;;  %v165_v36 = vpop.f32.mrb[3].mxu0  ;;  %v981_v38 = vsel %vm211_vm2, %v163_v34, -1e+30 }
 0x12b   :  { %v239_v37 = vpack.c.bf16 %v165_v36, %v161_v31 }
 0x12c   :  { %657 = vmatmul.mubr.bf16.vlgmr.msra.gmra.mrb[4].mxu1 %v394_v33 }
 0x12d   :  { %216 = vmax.xlane.f32.xlu0 %v981_v38  ;;  %637 = vmatmul.mubr.bf16.vlgmr.msra.gmra.mrb[4].mxu0 %v239_v37 }
 0x1b6   :  { %v215_v39 = vpop.xlane.xlu0 %214 }
 0x1b7   :  { %v218_v40 = vsub.f32 %v978_v30, %v215_v39 }
 0x1b9   :  { %v220_v41 = vmul.f32 1.442695, %v218_v40 }
 0x1ba   :  { %v217_v42 = vpop.xlane.xlu0 %216 }
 0x1bb   :  { %706 = vpow2.f32 %v220_v41  ;;  %v219_v43 = vsub.f32 %v981_v38, %v217_v42 }
 0x1bd   :  { %v222_v45 = vmul.f32 1.442695, %v219_v43 }
 0x1bf   :  { %708 = vpow2.f32 %v222_v45 }
 0x1c5   :  { %v707_v54 = vpop.eup %706 }
 0x1c9   :  { %v709_v58 = vpop.eup %708 }
 0x1ff   :  { %v986_v44 = vpop.f32.mrb[4].mxu1 }
 0x200   :  { %v500_v46 = vsel %vm236_vm3, %v986_v44, -inf  ;;  %v658_v47 = vpop.f32.mrb[5].mxu1  ;;  %v990_v48 = vpop.f32.mrb[4].mxu0 }
 0x201   :  { %501 = vmax.xlane.f32.xlu0 %v500_v46  ;;  %v992_v49 = vpop.f32.mrb[6].mxu1  ;;  %v638_v50 = vpop.f32.mrb[5].mxu0  ;;  %v345_v51 = vsel %vm236_vm3, %v990_v48, -inf }
 0x202   :  { %v659_v52 = vpop.f32.mrb[7].mxu1  ;;  %346 = vmax.xlane.f32.xlu1 %v345_v51  ;;  %v996_v53 = vpop.f32.mrb[6].mxu0  ;;  %v503_v57 = vsel %vm236_vm3, %v992_v49, -inf }
 0x203   :  { %v639_v55 = vpop.f32.mrb[7].mxu0  ;;  %v348_v56 = vsel %vm236_vm3, %v996_v53, -inf }
 0x205   :  { %224 = vadd.xlane.f32.xlu0 %v707_v54 }
 0x206   :  { %349 = vmax.xlane.f32.xlu1 %v348_v56 }
 0x20a   :  { %504 = vmax.xlane.f32.xlu1 %v503_v57 }
 0x20e   :  { %226 = vadd.xlane.f32.xlu1 %v709_v58 }
 0x28e   :  { %v502_v60 = vpop.xlane.xlu0 %501 }
 0x28f   :  { %v506_v61 = vsub.f32 %v986_v44, %v502_v60  ;;  %v347_v62 = vpop.xlane.xlu1 %346 }
 0x290   :  { %v351_v0 = vsub.f32 %v990_v48, %v347_v62 }
 0x291   :  { %v508_v63 = vmul.f32 1.442695, %v506_v61 }
 0x292   :  { %v225_v1 = vpop.xlane.xlu0 %224  ;;  %v353_v2 = vmul.f32 1.442695, %v351_v0 }
 0x293   :  { %710 = vpow2.f32 %v508_v63  ;;  %v1004_v3 = vpop.xlane.xlu1 %349 }
 0x294   :  { %712 = vlog2.f32 %v225_v1  ;;  %v352_v20 = vsub.f32 %v996_v53, %v1004_v3 }
 0x295   :  { %714 = vpow2.f32 %v353_v2 }
 0x296   :  { %v355_v22 = vmul.f32 1.442695, %v352_v20 }
 0x297   :  { %v1006_v4 = vpop.xlane.xlu1 %504 }
 0x298   :  { %v507_v19 = vsub.f32 %v992_v49, %v1006_v4 }
 0x29a   :  { %v510_v21 = vmul.f32 1.442695, %v507_v19 }
 0x29b   :  { %v227_v5 = vpop.xlane.xlu1 %226 }
 0x29c   :  { %716 = vlog2.f32 %v227_v5 }
 0x29d   :  { %v711_v6 = vpop.eup %710  ;;  %718 = vpow2.f32 %v510_v21 }
 0x29e   :  { %v713_v7 = vpop.eup %712  ;;  %v512_v8 = vsel %vm236_vm3, %v711_v6, 0.0  ;;  %720 = vpow2.f32 %v355_v22 }
 0x29f   :  { %v715_v9 = vpop.eup %714  ;;  %v229_v10 = vmul.f32 0.6931472, %v713_v7  ;;  %513 = vadd.xlane.f32.xlu0 %v512_v8 }
 0x2a0   :  { %v357_v12 = vsel %vm236_vm3, %v715_v9, 0.0 }
 0x2a1   :  { %v232_v11 = vadd.f32 %v229_v10, %v215_v39 }
 0x2a3   :  { %358 = vadd.xlane.f32.xlu0 %v357_v12  ;;  %v234_v13 = vsub.f32 %v978_v30, %v232_v11 }
 0x2a5   :  { %237 = vst.msk [vmem:[#allocation10] sm:$0xff] %vm236_vm3, %v234_v13 }
 0x2a6   :  { %v717_v14 = vpop.eup %716 }
 0x2a7   :  { %v231_v15 = vmul.f32 0.6931472, %v717_v14  ;;  %v719_v23 = vpop.eup %718 }
 0x2a8   :  { %v515_v24 = vsel %vm236_vm3, %v719_v23, 0.0  ;;  %v721_v25 = vpop.eup %720 }
 0x2a9   :  { %v233_v16 = vadd.f32 %v231_v15, %v217_v42  ;;  %v360_v26 = vsel %vm236_vm3, %v721_v25, 0.0 }
 0x2ab   :  { %v235_v17 = vsub.f32 %v981_v38, %v233_v16 }
 0x2ad   :  { %378 = vperm.xlu1 %678, %v235_v17   ;;  %238 = vst.msk [vmem:[#allocation10 + $0x8] sm:$0xff] %vm236_vm3, %v235_v17 }
 0x2b1   :  { %679 = vset.pattern.permute.xlu1 %v860_v18 }
 0x2b2   :  { %527 = vperm.xlu1 %679, %v234_v13  }
 0x2b9   :  { %373 = vperm.xlu0 %677, %v234_v13  }
 0x2bd   :  { %680 = vset.pattern.permute.xlu0 %v860_v18 }
 0x2d6   :  { %516 = vadd.xlane.f32.xlu1 %v515_v24 }
 0x2da   :  { %361 = vadd.xlane.f32.xlu1 %v360_v26 }
 0x2eb   :  { %531 = vperm.xlu1 %679, %v235_v17  }
 0x32c   :  { %v514_v27 = vpop.xlane.xlu0 %513  ;;  %v379_v30 = vpop.permute.xlu1 %378 }
 0x32d   :  { %722 = vlog2.f32 %v514_v27 }
 0x330   :  { %v359_v28 = vpop.xlane.xlu0 %358 }
 0x331   :  { %724 = vlog2.f32 %v359_v28  ;;  %v528_v36 = vpop.permute.xlu1 %527 }
 0x337   :  { %v723_v29 = vpop.eup %722 }
 0x338   :  { %v519_v31 = vmul.f32 0.6931472, %v723_v29  ;;  %v374_v40 = vpop.permute.xlu0 %373 }
 0x33a   :  { %v522_v32 = vadd.f32 %v519_v31, %v502_v60 }
 0x33b   :  { %v725_v33 = vpop.eup %724 }
 0x33c   :  { %v364_v34 = vmul.f32 0.6931472, %v725_v33  ;;  %v524_v35 = vsub.f32 %v986_v44, %v522_v32 }
 0x33e   :  { %v534_v37 = vadd.f32 %v528_v36, %v524_v35  ;;  %v367_v38 = vadd.f32 %v364_v34, %v347_v62 }
 0x340   :  { %v369_v39 = vsub.f32 %v990_v48, %v367_v38  ;;  %538 = vrot.lane.b32.xlu1 %v534_v37, %s861_s3 }
 0x342   :  { %v381_v41 = vadd.f32 %v374_v40, %v369_v39 }
 0x344   :  { %385 = vrot.lane.b32.xlu1 %v381_v41, %s862_s12 }
 0x363   :  { %v517_v42 = vpop.xlane.xlu1 %516 }
 0x364   :  { %726 = vlog2.f32 %v517_v42 }
 0x367   :  { %v362_v43 = vpop.xlane.xlu1 %361 }
 0x368   :  { %728 = vlog2.f32 %v362_v43 }
 0x36b   :  { %v532_v55 = vpop.permute.xlu1 %531 }
 0x36e   :  { %v727_v45 = vpop.eup %726 }
 0x36f   :  { %v521_v46 = vmul.f32 0.6931472, %v727_v45 }
 0x371   :  { %v523_v51 = vadd.f32 %v521_v46, %v1006_v4 }
 0x372   :  { %v729_v47 = vpop.eup %728 }
 0x373   :  { %v366_v44 = vmul.f32 0.6931472, %v729_v47  ;;  %v525_v52 = vsub.f32 %v992_v49, %v523_v51 }
 0x375   :  { %v368_v50 = vadd.f32 %v366_v44, %v1004_v3  ;;  %v535_v56 = vadd.f32 %v532_v55, %v525_v52 }
 0x377   :  { %v370_v48 = vsub.f32 %v996_v53, %v368_v50 }
 0x379   :  { %v382_v54 = vadd.f32 %v379_v30, %v370_v48 }
 0x37b   :  { %387 = vrot.lane.b32.xlu1 %v382_v54, %s862_s12 }
 0x37f   :  { %540 = vrot.lane.b32.xlu1 %v535_v56, %s861_s3 }
 0x3b2   :  { %v539_v57 = vpop.permute.xlu1 %538 }
 0x3b6   :  { %v386_v58 = vpop.permute.xlu1 %385 }
 0x3b7   :  { %392 = vst.msk [vmem:[#allocation10] sm:$0xff] %vm391_vm4, %v386_v58 }
 0x3b8   :  { %545 = vst.msk [vmem:[#allocation10] sm:$0xff] %vm544_vm5, %v539_v57 }
 0x3ed   :  { %v388_v59 = vpop.permute.xlu1 %387 }
 0x3ee   :  { %393 = vst.msk [vmem:[#allocation10 + $0x8] sm:$0xff] %vm391_vm4, %v388_v59 }
 0x3f1   :  { %v541_v53 = vpop.permute.xlu1 %540 }
 0x3f2   :  { %546 = vst.msk [vmem:[#allocation10 + $0x8] sm:$0xff] %vm544_vm5, %v541_v53 }
 0x3f3   :  { %829 = shalt.err (!%p826_p8)
}
 0x3f4   :  { %s830_s17 = scalar_lea.hbm %s1045_s4, 256 }
 0x3f5   :  { %p831_p9 = scmp.ne.s32.totalorder %s1045_s4, %s830_s17  ;;  %p834_p10 = scmp.lt.u32.totalorder %s830_s17, %s1045_s4 }
 0x3f7   :  { %p836_p11 = pnand %p834_p10, %p831_p9 }
 0x3f9   :  { %839 = shalt.err (!%p836_p11)
}
 0x3fa   :  { %s864_s22 = smov 128  }
 0x3fb   :  { %558 = dma.vmem_to_hbm [thread:$0]  %s553_s13, 256, %s1045_s4, [#allocation4], %s864_s22, %s864_s22, %s862_s12  }
 0x3fc   :  { %846 = dma.done.wait [#allocation4], 256  }
 0x3fd   :  { %847 = vsyncadd [#allocation4], 4294967040 }
 0x3fe   :  { %562 = vsyncpa [#allocation3], 1 }
 0x3ff   :  { %563 = vsyncpa [#allocation6], 1 }
 0x400   :  { %564 = vsyncpa [#allocation9], 1 }
 0x401   :  { %565 = vsyncpa [#allocation4], 1 }

// kernel: tpu_custom_call.1
= control target key start
LH: loop header
LB: loop body
LE: loop exit
PB: predicated region body
PF: predicated region fallthrough
CT: control target
= control target key end

     0   :  { %9 = vsyncpa [#allocation3], 0  ;;  %s1041_s0 = inlined_call_operand.hbm [shape: bf16[16,32], index: 0, kind: input, shape index: {}]   ;;  %s1042_s1 = inlined_call_operand.hbm [shape: bf16[32,384], index: 1, kind: input, shape index: {}]   ;;  %s1043_s2 = inlined_call_operand.hbm [shape: bf16[128,8], index: 2, kind: input, shape index: {}]   ;;  %s1044_s3 = inlined_call_operand.hbm [shape: bf16[128,8], index: 3, kind: input, shape index: {}]   ;;  %s1045_s4 = inlined_call_operand.hbm [shape: f32[16,24], index: 4, kind: output, shape index: {}]  }
   0x1   :  { %10 = vsyncpa [#allocation6], 0 }
   0x2   :  { %11 = vsyncpa [#allocation9], 0 }
   0x3   :  { %12 = vsyncpa [#allocation4], 0  ;;  %s848_s15 = smov [#allocation5]   ;;  %s730_s19 = scalar_lea.hbm %s1042_s1, 768 }
   0x4   :  { %s30_s16 = sshll.u32 %s848_s15, 4  ;;  %p731_p0 = scmp.ne.s32.totalorder %s1042_s1, %s730_s19  ;;  %s31_s16 = int_to_ptr.vmem [resolvable:$true] %s30_s16 }
   0x5   :  { %p734_p1 = scmp.lt.u32.totalorder %s730_s19, %s1042_s1 }
   0x7   :  { %p736_p2 = pnand %p734_p1, %p731_p0 }
   0x9   :  { %739 = shalt.err (!%p736_p2)
}
   0xa   :  { %s740_s24 = scalar_lea.vmem %s31_s16, 768  ;;  %p745_p4 = scmp.lt.s32.totalorder %s31_s16, %s31_s16 }
   0xb   :  { %p741_p3 = scmp.ne.s32.totalorder %s31_s16, %s740_s24  ;;  %p746_p5 = scmp.lt.s32.totalorder %s740_s24, %s740_s24 }
   0xd   :  { %p747_p6 = por %p746_p5, %p745_p4 }
   0xf   :  { %p748_p7 = pnand %p747_p6, %p741_p3 }
  0x11   :  { %751 = shalt.err (!%p748_p7)
}
  0x12   :  { %s849_s25 = smov 192   ;;  %s850_s26 = smov 12  }
  0x13   :  { %36 = dma.hbm_to_vmem [thread:$0]  %s1042_s1, 768, %s31_s16, [#allocation6], %s849_s25, %s849_s25, %s850_s26  }
  0x14   :  { %s851_s29 = smov [#allocation2]   ;;  %s752_s7 = scalar_lea.hbm %s1041_s0, 128 }
  0x15   :  { %s18_s30 = sshll.u32 %s851_s29, 4  ;;  %p753_p8 = scmp.ne.s32.totalorder %s1041_s0, %s752_s7  ;;  %s19_s30 = int_to_ptr.vmem [resolvable:$true] %s18_s30 }
  0x16   :  { %p756_p9 = scmp.lt.u32.totalorder %s752_s7, %s1041_s0 }
  0x18   :  { %p758_p10 = pnand %p756_p9, %p753_p8 }
  0x1a   :  { %761 = shalt.err (!%p758_p10)
}
  0x1b   :  { %s762_s12 = scalar_lea.vmem %s19_s30, 128  ;;  %p767_p12 = scmp.lt.s32.totalorder %s19_s30, %s19_s30 }
  0x1c   :  { %p763_p11 = scmp.ne.s32.totalorder %s19_s30, %s762_s12  ;;  %p768_p13 = scmp.lt.s32.totalorder %s762_s12, %s762_s12 }
  0x1e   :  { %p769_p0 = por %p768_p13, %p767_p12 }
  0x20   :  { %p770_p1 = pnand %p769_p0, %p763_p11 }
  0x22   :  { %773 = shalt.err (!%p770_p1)
}
  0x23   :  { %s852_s1 = smov 64   ;;  %s853_s13 = smov 4  }
  0x24   :  { %24 = dma.hbm_to_vmem [thread:$0]  %s1041_s0, 128, %s19_s30, [#allocation3], %s852_s1, %s852_s1, %s853_s13  }
  0x25   :  { %s854_s16 = smov [#allocation7]   ;;  %s855_s18 = smov [#allocation8]  }
  0x26   :  { %s42_s17 = sshll.u32 %s854_s16, 4  ;;  %s54_s19 = sshll.u32 %s855_s18, 4  ;;  %s43_s17 = int_to_ptr.vmem [resolvable:$true] %s42_s17  ;;  %s917_s19 = int_to_ptr.vmem [resolvable:$true] %s54_s19 }
  0x27   :  { %s774_s22 = scalar_lea.hbm %s1043_s2, 1024 }
  0x28   :  { %p775_p2 = scmp.ne.s32.totalorder %s1043_s2, %s774_s22  ;;  %p778_p3 = scmp.lt.u32.totalorder %s774_s22, %s1043_s2 }
  0x2a   :  { %p780_p4 = pnand %p778_p3, %p775_p2 }
  0x2c   :  { %783 = shalt.err (!%p780_p4)
}
  0x2d   :  { %s784_s0 = scalar_lea.vmem %s43_s17, 1024  ;;  %p789_p6 = scmp.lt.s32.totalorder %s43_s17, %s43_s17 }
  0x2e   :  { %p785_p5 = scmp.ne.s32.totalorder %s43_s17, %s784_s0  ;;  %p790_p7 = scmp.lt.s32.totalorder %s784_s0, %s784_s0 }
  0x30   :  { %p791_p8 = por %p790_p7, %p789_p6 }
  0x32   :  { %p792_p9 = pnand %p791_p8, %p785_p5 }
  0x34   :  { %795 = shalt.err (!%p792_p9)
}
  0x35   :  { %48 = dma.hbm_to_vmem [thread:$0]  %s1043_s2, 1024, %s43_s17, [#allocation6], %s852_s1, %s852_s1, %s853_s13  }
  0x36   :  { %s796_s5 = scalar_lea.hbm %s1044_s3, 1024 }
  0x37   :  { %p797_p10 = scmp.ne.s32.totalorder %s1044_s3, %s796_s5  ;;  %p800_p11 = scmp.lt.u32.totalorder %s796_s5, %s1044_s3 }
  0x39   :  { %p802_p12 = pnand %p800_p11, %p797_p10 }
  0x3b   :  { %805 = shalt.err (!%p802_p12)
}
  0x3c   :  { %s806_s10 = scalar_lea.vmem %s917_s19, 1024  ;;  %p811_p0 = scmp.lt.s32.totalorder %s917_s19, %s917_s19 }
  0x3d   :  { %p807_p13 = scmp.ne.s32.totalorder %s917_s19, %s806_s10  ;;  %p812_p1 = scmp.lt.s32.totalorder %s806_s10, %s806_s10 }
  0x3f   :  { %p813_p2 = por %p812_p1, %p811_p0 }
  0x41   :  { %p814_p3 = pnand %p813_p2, %p807_p13 }
  0x43   :  { %817 = shalt.err (!%p814_p3)
}
  0x44   :  { %60 = dma.hbm_to_vmem [thread:$0]  %s1044_s3, 1024, %s917_s19, [#allocation9], %s852_s1, %s852_s1, %s853_s13  }
  0x45   :  { %840 = dma.done.wait [#allocation3], 128  }
  0x46   :  { %841 = vsyncadd [#allocation3], 4294967168 }
  0x47   :  { %842 = dma.done.wait [#allocation6], 1792  }
  0x48   :  { %843 = vsyncadd [#allocation6], 4294965504 }
  0x49   :  { %844 = dma.done.wait [#allocation9], 1024  }
  0x4a   :  { %845 = vsyncadd [#allocation9], 4294966272  ;;  %v856_v0 = vmov 0.0   ;;  %vm857_vm0 = vmmov 0   ;;  %v858_v1 = vmov 0   ;;  %v689_v8 = vld [vmem:[#allocation2] sm:$0xff]   ;;  %v209_v25 = vlaneseq }
  0x4b   :  { %612 = vmatprep.subr.bf16.mxu1 %v856_v0  ;;  %616 = vmatprep.mubr.msk.bf16.mxu1 %vm857_vm0, %v856_v0  ;;  %v681_v2 = vld [vmem:[#allocation5 + $0x4] ss:$12 sps:$4 sm:$0xff]   ;;  %v683_v3 = vld [vmem:[#allocation5 + $0x8] ss:$12 sps:$4 sm:$0xff]   ;;  %v684_v4 = vld [vmem:[#allocation5] ss:$12 sps:$4 sm:$0xff]  }
  0x4c   :  { %157 = vmatprep.mubr.bf16.mxu0 %v858_v1  ;;  %125 = vmatprep.subr.bf16.mxu0 %v681_v2  ;;  %v685_v5 = vld [vmem:[#allocation5 + $0x1c] ss:$12 sps:$4 sm:$0xff]   ;;  %v687_v6 = vld [vmem:[#allocation5 + $0x20] ss:$12 sps:$4 sm:$0xff]   ;;  %v688_v7 = vld [vmem:[#allocation5 + $0x18] ss:$12 sps:$4 sm:$0xff]  }
  0x4d   :  { %613 = vmatpush3.bf16.msra.mxu1 %v683_v3  ;;  %126 = vmatpush1.bf16.msra.mxu0 %v684_v4  ;;  %vm121_vm1 = vcmask 261120   ;;  %v690_v9 = vld [vmem:[#allocation8] sm:$0xff]   ;;  %v692_v11 = vld [vmem:[#allocation8 + $0x8] sm:$0xff]   ;;  %v694_v13 = vld [vmem:[#allocation8 + $0x10] sm:$0xff]   ;;  %v210_v26 = vand.u32 127, %v209_v25  ;;  %vm236_vm3 = vcmask 64512  }
  0x4e   :  { %614 = vmatprep.subr.bf16.mxu1 %v856_v0  ;;  %127 = vmatprep.subr.bf16.mxu0 %v685_v5  ;;  %v691_v10 = vld [vmem:[#allocation7] sm:$0xff]   ;;  %v693_v12 = vld [vmem:[#allocation7 + $0x8] sm:$0xff]   ;;  %v695_v14 = vld [vmem:[#allocation7 + $0x10] sm:$0xff]   ;;  %v859_v59 = vmov 8   ;;  %s861_s3 = smov 16   ;;  %s862_s12 = smov 8  }
  0x4f   :  { %v696_v15 = vld [vmem:[#allocation8 + $0x18] sm:$0xff]   ;;  %v698_v17 = vld [vmem:[#allocation8 + $0x20] sm:$0xff]   ;;  %v700_v19 = vld [vmem:[#allocation8 + $0x28] sm:$0xff]   ;;  %vm211_vm2 = vcmp.lt.s32.totalorder %v210_v26, 10  ;;  %678 = vset.pattern.permute.xlu1 %v859_v59  ;;  %677 = vset.pattern.permute.xlu0 %v859_v59  ;;  %vm391_vm4 = vcmask 130112   ;;  %vm544_vm5 = vcmask 195712  }
  0x50   :  { %v697_v16 = vld [vmem:[#allocation7 + $0x18] sm:$0xff]   ;;  %v699_v18 = vld [vmem:[#allocation7 + $0x20] sm:$0xff]   ;;  %v701_v20 = vld [vmem:[#allocation7 + $0x28] sm:$0xff]   ;;  %s863_s1 = smov [#allocation10]  }
  0x51   :  { %615 = vmatpush3.bf16.msra.mxu1 %v687_v6  ;;  %128 = vmatpush1.bf16.msra.mxu0 %v688_v7  ;;  %v702_v21 = vld [vmem:[#allocation8 + $0x30] sm:$0xff]   ;;  %v704_v23 = vld [vmem:[#allocation8 + $0x38] sm:$0xff]   ;;  %s552_s13 = sshll.u32 %s863_s1, 4  ;;  %s553_s13 = int_to_ptr.vmem [resolvable:$true] %s552_s13 }
  0x52   :  { %640 = vmatprep.subr.bf16.mxu1 %v856_v0  ;;  %620 = vmatprep.subr.bf16.mxu0 %v856_v0  ;;  %v703_v22 = vld [vmem:[#allocation7 + $0x30] sm:$0xff]   ;;  %v705_v24 = vld [vmem:[#allocation7 + $0x38] sm:$0xff]   ;;  %s818_s14 = scalar_lea.vmem %s553_s13, 256  ;;  %p823_p5 = scmp.lt.s32.totalorder %s553_s13, %s553_s13 }
  0x53   :  { %p819_p4 = scmp.ne.s32.totalorder %s553_s13, %s818_s14  ;;  %p824_p6 = scmp.lt.s32.totalorder %s818_s14, %s818_s14 }
  0x54   :  { %617 = vmatmul.mubr.msk.bf16.vlgmr.msra.gmra.mrb[0].mxu1 %vm121_vm1, %v689_v8  ;;  %573 = vmatmul.mubr.msk.bf16.vlgmr.msra.gmra.mrb[0].mxu0 %vm121_vm1, %v689_v8 }
  0x55   :  { %641 = vmatpush3.bf16.msra.mxu1 %v690_v9  ;;  %621 = vmatpush3.bf16.msra.mxu0 %v691_v10  ;;  %p825_p7 = por %p824_p6, %p823_p5 }
  0x56   :  { %642 = vmatprep.subr.bf16.mxu1 %v856_v0  ;;  %622 = vmatprep.subr.bf16.mxu0 %v856_v0 }
  0x57   :  { %656 = vmatprep.mubr.msk.bf16.mxu1 %vm857_vm0, %v856_v0  ;;  %636 = vmatprep.mubr.msk.bf16.mxu0 %vm857_vm0, %v856_v0  ;;  %p826_p8 = pnand %p825_p7, %p819_p4 }
  0x59   :  { %643 = vmatpush3.bf16.msra.mxu1 %v692_v11  ;;  %623 = vmatpush3.bf16.msra.mxu0 %v693_v12 }
  0x5a   :  { %644 = vmatprep.subr.bf16.mxu1 %v856_v0  ;;  %624 = vmatprep.subr.bf16.mxu0 %v856_v0 }
  0x5d   :  { %645 = vmatpush3.bf16.msra.mxu1 %v694_v13  ;;  %625 = vmatpush3.bf16.msra.mxu0 %v695_v14 }
  0x5e   :  { %646 = vmatprep.subr.bf16.mxu1 %v856_v0  ;;  %626 = vmatprep.subr.bf16.mxu0 %v856_v0 }
  0x61   :  { %647 = vmatpush3.bf16.msra.mxu1 %v696_v15  ;;  %627 = vmatpush3.bf16.msra.mxu0 %v697_v16 }
  0x62   :  { %648 = vmatprep.subr.bf16.mxu1 %v856_v0  ;;  %628 = vmatprep.subr.bf16.mxu0 %v856_v0 }
  0x65   :  { %649 = vmatpush3.bf16.msra.mxu1 %v698_v17  ;;  %629 = vmatpush3.bf16.msra.mxu0 %v699_v18  ;;  %v860_v18 = vmov 9  }
  0x66   :  { %650 = vmatprep.subr.bf16.mxu1 %v856_v0  ;;  %630 = vmatprep.subr.bf16.mxu0 %v856_v0 }
  0x69   :  { %651 = vmatpush3.bf16.msra.mxu1 %v700_v19  ;;  %631 = vmatpush3.bf16.msra.mxu0 %v701_v20 }
  0x6a   :  { %652 = vmatprep.subr.bf16.mxu1 %v856_v0  ;;  %632 = vmatprep.subr.bf16.mxu0 %v856_v0 }
  0x6d   :  { %653 = vmatpush3.bf16.msra.mxu1 %v702_v21  ;;  %633 = vmatpush3.bf16.msra.mxu0 %v703_v22 }
  0x6e   :  { %654 = vmatprep.subr.bf16.mxu1 %v856_v0  ;;  %634 = vmatprep.subr.bf16.mxu0 %v856_v0 }
  0x71   :  { %655 = vmatpush3.bf16.msra.mxu1 %v704_v23  ;;  %635 = vmatpush3.bf16.msra.mxu0 %v705_v24 }
 0x127   :  { %v202_v27 = vpop.f32.mrb[0].mxu1  ;;  %v159_v28 = vpop.f32.mrb[0].mxu0 }
 0x128   :  { %v618_v29 = vpop.f32.mrb[1].mxu1  ;;  %v978_v30 = vsel %vm211_vm2, %v159_v28, -1e+30  ;;  %v161_v31 = vpop.f32.mrb[1].mxu0 }
 0x129   :  { %v205_v32 = vpop.f32.mrb[2].mxu1  ;;  %214 = vmax.xlane.f32.xlu0 %v978_v30  ;;  %v163_v34 = vpop.f32.mrb[2].mxu0 }
 0x12a   :  { %v394_v33 = vpack.c.bf16 %v205_v32, %v202_v27  ;;  %v619_v35 = vpop.f32.mrb[3].mxu1  ;;  %v165_v36 = vpop.f32.mrb[3].mxu0  ;;  %v981_v38 = vsel %vm211_vm2, %v163_v34, -1e+30 }
 0x12b   :  { %v239_v37 = vpack.c.bf16 %v165_v36, %v161_v31 }
 0x12c   :  { %657 = vmatmul.mubr.bf16.vlgmr.msra.gmra.mrb[4].mxu1 %v394_v33 }
 0x12d   :  { %216 = vmax.xlane.f32.xlu0 %v981_v38  ;;  %637 = vmatmul.mubr.bf16.vlgmr.msra.gmra.mrb[4].mxu0 %v239_v37 }
 0x1b6   :  { %v215_v39 = vpop.xlane.xlu0 %214 }
 0x1b7   :  { %v218_v40 = vsub.f32 %v978_v30, %v215_v39 }
 0x1b9   :  { %v220_v41 = vmul.f32 1.442695, %v218_v40 }
 0x1ba   :  { %v217_v42 = vpop.xlane.xlu0 %216 }
 0x1bb   :  { %706 = vpow2.f32 %v220_v41  ;;  %v219_v43 = vsub.f32 %v981_v38, %v217_v42 }
 0x1bd   :  { %v222_v45 = vmul.f32 1.442695, %v219_v43 }
 0x1bf   :  { %708 = vpow2.f32 %v222_v45 }
 0x1c5   :  { %v707_v54 = vpop.eup %706 }
 0x1c9   :  { %v709_v58 = vpop.eup %708 }
 0x1ff   :  { %v986_v44 = vpop.f32.mrb[4].mxu1 }
 0x200   :  { %v500_v46 = vsel %vm236_vm3, %v986_v44, -inf  ;;  %v658_v47 = vpop.f32.mrb[5].mxu1  ;;  %v990_v48 = vpop.f32.mrb[4].mxu0 }
 0x201   :  { %501 = vmax.xlane.f32.xlu0 %v500_v46  ;;  %v992_v49 = vpop.f32.mrb[6].mxu1  ;;  %v638_v50 = vpop.f32.mrb[5].mxu0  ;;  %v345_v51 = vsel %vm236_vm3, %v990_v48, -inf }
 0x202   :  { %v659_v52 = vpop.f32.mrb[7].mxu1  ;;  %346 = vmax.xlane.f32.xlu1 %v345_v51  ;;  %v996_v53 = vpop.f32.mrb[6].mxu0  ;;  %v503_v57 = vsel %vm236_vm3, %v992_v49, -inf }
 0x203   :  { %v639_v55 = vpop.f32.mrb[7].mxu0  ;;  %v348_v56 = vsel %vm236_vm3, %v996_v53, -inf }
 0x205   :  { %224 = vadd.xlane.f32.xlu0 %v707_v54 }
 0x206   :  { %349 = vmax.xlane.f32.xlu1 %v348_v56 }
 0x20a   :  { %504 = vmax.xlane.f32.xlu1 %v503_v57 }
 0x20e   :  { %226 = vadd.xlane.f32.xlu1 %v709_v58 }
 0x28e   :  { %v502_v60 = vpop.xlane.xlu0 %501 }
 0x28f   :  { %v506_v61 = vsub.f32 %v986_v44, %v502_v60  ;;  %v347_v62 = vpop.xlane.xlu1 %346 }
 0x290   :  { %v351_v0 = vsub.f32 %v990_v48, %v347_v62 }
 0x291   :  { %v508_v63 = vmul.f32 1.442695, %v506_v61 }
 0x292   :  { %v225_v1 = vpop.xlane.xlu0 %224  ;;  %v353_v2 = vmul.f32 1.442695, %v351_v0 }
 0x293   :  { %710 = vpow2.f32 %v508_v63  ;;  %v1004_v3 = vpop.xlane.xlu1 %349 }
 0x294   :  { %712 = vlog2.f32 %v225_v1  ;;  %v352_v20 = vsub.f32 %v996_v53, %v1004_v3 }
 0x295   :  { %714 = vpow2.f32 %v353_v2 }
 0x296   :  { %v355_v22 = vmul.f32 1.442695, %v352_v20 }
 0x297   :  { %v1006_v4 = vpop.xlane.xlu1 %504 }
 0x298   :  { %v507_v19 = vsub.f32 %v992_v49, %v1006_v4 }
 0x29a   :  { %v510_v21 = vmul.f32 1.442695, %v507_v19 }
 0x29b   :  { %v227_v5 = vpop.xlane.xlu1 %226 }
 0x29c   :  { %716 = vlog2.f32 %v227_v5 }
 0x29d   :  { %v711_v6 = vpop.eup %710  ;;  %718 = vpow2.f32 %v510_v21 }
 0x29e   :  { %v713_v7 = vpop.eup %712  ;;  %v512_v8 = vsel %vm236_vm3, %v711_v6, 0.0  ;;  %720 = vpow2.f32 %v355_v22 }
 0x29f   :  { %v715_v9 = vpop.eup %714  ;;  %v229_v10 = vmul.f32 0.6931472, %v713_v7  ;;  %513 = vadd.xlane.f32.xlu0 %v512_v8 }
 0x2a0   :  { %v357_v12 = vsel %vm236_vm3, %v715_v9, 0.0 }
 0x2a1   :  { %v232_v11 = vadd.f32 %v229_v10, %v215_v39 }
 0x2a3   :  { %358 = vadd.xlane.f32.xlu0 %v357_v12  ;;  %v234_v13 = vsub.f32 %v978_v30, %v232_v11 }
 0x2a5   :  { %237 = vst.msk [vmem:[#allocation10] sm:$0xff] %vm236_vm3, %v234_v13 }
 0x2a6   :  { %v717_v14 = vpop.eup %716 }
 0x2a7   :  { %v231_v15 = vmul.f32 0.6931472, %v717_v14  ;;  %v719_v23 = vpop.eup %718 }
 0x2a8   :  { %v515_v24 = vsel %vm236_vm3, %v719_v23, 0.0  ;;  %v721_v25 = vpop.eup %720 }
 0x2a9   :  { %v233_v16 = vadd.f32 %v231_v15, %v217_v42  ;;  %v360_v26 = vsel %vm236_vm3, %v721_v25, 0.0 }
 0x2ab   :  { %v235_v17 = vsub.f32 %v981_v38, %v233_v16 }
 0x2ad   :  { %378 = vperm.xlu1 %678, %v235_v17   ;;  %238 = vst.msk [vmem:[#allocation10 + $0x8] sm:$0xff] %vm236_vm3, %v235_v17 }
 0x2b1   :  { %679 = vset.pattern.permute.xlu1 %v860_v18 }
 0x2b2   :  { %527 = vperm.xlu1 %679, %v234_v13  }
 0x2b9   :  { %373 = vperm.xlu0 %677, %v234_v13  }
 0x2bd   :  { %680 = vset.pattern.permute.xlu0 %v860_v18 }
 0x2d6   :  { %516 = vadd.xlane.f32.xlu1 %v515_v24 }
 0x2da   :  { %361 = vadd.xlane.f32.xlu1 %v360_v26 }
 0x2eb   :  { %531 = vperm.xlu1 %679, %v235_v17  }
 0x32c   :  { %v514_v27 = vpop.xlane.xlu0 %513  ;;  %v379_v30 = vpop.permute.xlu1 %378 }
 0x32d   :  { %722 = vlog2.f32 %v514_v27 }
 0x330   :  { %v359_v28 = vpop.xlane.xlu0 %358 }
 0x331   :  { %724 = vlog2.f32 %v359_v28  ;;  %v528_v36 = vpop.permute.xlu1 %527 }
 0x337   :  { %v723_v29 = vpop.eup %722 }
 0x338   :  { %v519_v31 = vmul.f32 0.6931472, %v723_v29  ;;  %v374_v40 = vpop.permute.xlu0 %373 }
 0x33a   :  { %v522_v32 = vadd.f32 %v519_v31, %v502_v60 }
 0x33b   :  { %v725_v33 = vpop.eup %724 }
 0x33c   :  { %v364_v34 = vmul.f32 0.6931472, %v725_v33  ;;  %v524_v35 = vsub.f32 %v986_v44, %v522_v32 }
 0x33e   :  { %v534_v37 = vadd.f32 %v528_v36, %v524_v35  ;;  %v367_v38 = vadd.f32 %v364_v34, %v347_v62 }
 0x340   :  { %v369_v39 = vsub.f32 %v990_v48, %v367_v38  ;;  %538 = vrot.lane.b32.xlu1 %v534_v37, %s861_s3 }
 0x342   :  { %v381_v41 = vadd.f32 %v374_v40, %v369_v39 }
 0x344   :  { %385 = vrot.lane.b32.xlu1 %v381_v41, %s862_s12 }
 0x363   :  { %v517_v42 = vpop.xlane.xlu1 %516 }
 0x364   :  { %726 = vlog2.f32 %v517_v42 }
 0x367   :  { %v362_v43 = vpop.xlane.xlu1 %361 }
 0x368   :  { %728 = vlog2.f32 %v362_v43 }
 0x36b   :  { %v532_v55 = vpop.permute.xlu1 %531 }
 0x36e   :  { %v727_v45 = vpop.eup %726 }
 0x36f   :  { %v521_v46 = vmul.f32 0.6931472, %v727_v45 }
 0x371   :  { %v523_v51 = vadd.f32 %v521_v46, %v1006_v4 }
 0x372   :  { %v729_v47 = vpop.eup %728 }
 0x373   :  { %v366_v44 = vmul.f32 0.6931472, %v729_v47  ;;  %v525_v52 = vsub.f32 %v992_v49, %v523_v51 }
 0x375   :  { %v368_v50 = vadd.f32 %v366_v44, %v1004_v3  ;;  %v535_v56 = vadd.f32 %v532_v55, %v525_v52 }
 0x377   :  { %v370_v48 = vsub.f32 %v996_v53, %v368_v50 }
 0x379   :  { %v382_v54 = vadd.f32 %v379_v30, %v370_v48 }
 0x37b   :  { %387 = vrot.lane.b32.xlu1 %v382_v54, %s862_s12 }
 0x37f   :  { %540 = vrot.lane.b32.xlu1 %v535_v56, %s861_s3 }
 0x3b2   :  { %v539_v57 = vpop.permute.xlu1 %538 }
 0x3b6   :  { %v386_v58 = vpop.permute.xlu1 %385 }
 0x3b7   :  { %392 = vst.msk [vmem:[#allocation10] sm:$0xff] %vm391_vm4, %v386_v58 }
 0x3b8   :  { %545 = vst.msk [vmem:[#allocation10] sm:$0xff] %vm544_vm5, %v539_v57 }
 0x3ed   :  { %v388_v59 = vpop.permute.xlu1 %387 }
 0x3ee   :  { %393 = vst.msk [vmem:[#allocation10 + $0x8] sm:$0xff] %vm391_vm4, %v388_v59 }
 0x3f1   :  { %v541_v53 = vpop.permute.xlu1 %540 }
 0x3f2   :  { %546 = vst.msk [vmem:[#allocation10 + $0x8] sm:$0xff] %vm544_vm5, %v541_v53 }
 0x3f3   :  { %829 = shalt.err (!%p826_p8)
}
 0x3f4   :  { %s830_s17 = scalar_lea.hbm %s1045_s4, 256 }
 0x3f5   :  { %p831_p9 = scmp.ne.s32.totalorder %s1045_s4, %s830_s17  ;;  %p834_p10 = scmp.lt.u32.totalorder %s830_s17, %s1045_s4 }
 0x3f7   :  { %p836_p11 = pnand %p834_p10, %p831_p9 }
 0x3f9   :  { %839 = shalt.err (!%p836_p11)
}
 0x3fa   :  { %s864_s22 = smov 128  }
 0x3fb   :  { %558 = dma.vmem_to_hbm [thread:$0]  %s553_s13, 256, %s1045_s4, [#allocation4], %s864_s22, %s864_s22, %s862_s12  }
 0x3fc   :  { %846 = dma.done.wait [#allocation4], 256  }
 0x3fd   :  { %847 = vsyncadd [#allocation4], 4294967040 }
 0x3fe   :  { %562 = vsyncpa [#allocation3], 1 }
 0x3ff   :  { %563 = vsyncpa [#allocation6], 1 }
 0x400   :  { %564 = vsyncpa [#allocation9], 1 }
 0x401   :  { %565 = vsyncpa [#allocation4], 1 }

</bundles_post_ra>
